<compile_context>
chip_gen: v7x
topology: tpu7x:2x2x1
jax: 0.10.0
libtpu: 0.0.40
codegen_flags: <defaults>
</compile_context>

<pallas_src>
import jax
import jax.numpy as jnp
from jax.experimental import pallas as pl
from jax.experimental.pallas import tpu as pltpu

INPUT_DIM = 61
H1 = 32
H2 = 8
H_PAD = 128          # lane-padded hidden width (costs nothing: lanes pad to 128)


def _mlp_kernel(x_ref, w1_ref, b1_ref, w2t_ref, b2_ref, w3_ref, b3_ref, o_ref):
    """One batch tile: x (TB, 61) -> lane-dense output row (1, TB)."""
    # ---- Layer 1: Linear(61 -> 32), zero-padded to 128 output lanes (MXU).
    x = x_ref[...].astype(w1_ref.dtype)                     # optional bf16 cast
    h1 = jnp.dot(x, w1_ref[...], preferred_element_type=jnp.float32)
    h1 = jnp.maximum(h1 + b1_ref[...], 0.0)                 # (TB, 128), cols>=32 are 0

    # ---- One batch->lane relayout on an (8,128)-aligned f32 tile (XLU).
    h1t = h1.T                                              # (128, TB)

    # ---- Layer 2: Linear(32 -> 8) computed transposed (MXU, tiny M=8).
    h2t = jnp.dot(w2t_ref[...], h1t.astype(w2t_ref.dtype),
                  preferred_element_type=jnp.float32)       # (8, TB)
    h2t = jnp.maximum(h2t + b2_ref[...], 0.0)

    # ---- Output layer: Linear(8 -> 1) as a sublane reduction (VPU/XLU).
    out_row = jnp.sum(h2t * w3_ref[...], axis=0, keepdims=True) + b3_ref[...]

    o_ref[0] = out_row.astype(o_ref.dtype)                  # lane-dense store


def _round_up(n, m):
    return ((n + m - 1) // m) * m


def _prep_params(params, compute_dtype):
    """Zero-pad / transpose the parameters into MXU- and lane-friendly shapes."""
    w1, b1, w2, b2, w3, b3 = params
    in_dim, h1 = w1.shape
    h2 = w2.shape[1]
    w1p = jnp.zeros((in_dim, H_PAD), jnp.float32).at[:, :h1].set(w1).astype(compute_dtype)
    b1p = jnp.zeros((1, H_PAD), jnp.float32).at[:, :h1].set(b1.reshape(1, h1))
    w2tp = jnp.zeros((h2, H_PAD), jnp.float32).at[:, :h1].set(w2.T).astype(compute_dtype)
    b2c = b2.reshape(h2, 1).astype(jnp.float32)
    w3c = w3.reshape(h2, 1).astype(jnp.float32)
    b3c = b3.reshape(1, 1).astype(jnp.float32)
    return w1p, b1p, w2tp, b2c, w3c, b3c


def ctest_mlr_linear_forward(x, params, *, tile_batch=4096, compute_dtype=jnp.bfloat16):
    """Fused, batch-tiled forward pass of the 3-layer MLP (61 -> 32 -> 8 -> 1)."""
    batch, in_dim = x.shape
    w1p, b1p, w2tp, b2c, w3c, b3c = _prep_params(params, compute_dtype)
    assert in_dim == w1p.shape[0]

    # Tile size: large enough to amortize per-grid-step overhead, a multiple of
    # 8 (sublane granule), and chosen so the grid has >= 2 steps whenever the
    # batch allows it (both v7x TensorCores get work via "parallel" semantics).
    if batch >= 256:
        tb = min(tile_batch, _round_up(pl.cdiv(batch, 2), 128))
    else:
        tb = _round_up(batch, 8)
    grid_n = pl.cdiv(batch, tb)

    def const(a):  # VMEM-resident weights/biases: same block every step
        return pl.BlockSpec(a.shape, lambda i: (0,) * a.ndim)

    out = pl.pallas_call(
        _mlp_kernel,
        out_shape=jax.ShapeDtypeStruct((grid_n, 1, tb), jnp.float32),
        grid=(grid_n,),
        in_specs=[
            pl.BlockSpec((tb, in_dim), lambda i: (i, 0)),    # x: batch-tiled
            const(w1p), const(b1p),
            const(w2tp), const(b2c),
            const(w3c), const(b3c),
        ],
        out_specs=pl.BlockSpec((1, 1, tb), lambda i: (i, 0, 0)),
        compiler_params=pltpu.CompilerParams(
            dimension_semantics=("parallel",),               # megacore split on v7x
            vmem_limit_bytes=32 * 1024 * 1024,               # safe on v5e/v6e/v7x
        ),
    )(x, w1p, b1p, w2tp, b2c, w3c, b3c)

    # (grid_n, 1, tb) -> (batch, 1).  Rows past `batch` come from the ragged
    # last block (garbage input rows) and are sliced off here — never consumed.
    return out.reshape(grid_n * tb)[:batch].reshape(batch, 1)


def init_params(key, input_dim=INPUT_DIM, config=(H1, H2)):
    """Deterministic parameter init (shapes match the PyTorch module)."""
    dims = [input_dim] + list(config) + [1]
    params = []
    for din, dout in zip(dims[:-1], dims[1:]):
        kw, kb, key = jax.random.split(key, 3)
        bound = 1.0 / jnp.sqrt(din)  # same scale as torch.nn.Linear default
        w = jax.random.uniform(kw, (din, dout), jnp.float32, -bound, bound)
        b = jax.random.uniform(kb, (1, dout), jnp.float32, -bound, bound)
        params += [w, b]
    return tuple(params)


def reference_forward(x, params):
    """Pure-JAX reference for correctness check."""
    w1, b1, w2, b2, w3, b3 = params
    h = jnp.maximum(x @ w1 + b1, 0.0)
    h = jnp.maximum(h @ w2 + b2, 0.0)
    return h @ w3 + b3


if __name__ == "__main__":
    key = jax.random.PRNGKey(0)
    kx, kp = jax.random.split(key)

    params = init_params(kp)

    # Small, module-consistent batch (single grid step), full f32 path.
    x_small = jax.random.normal(kx, (8, INPUT_DIM), dtype=jnp.float32)
    out_small = ctest_mlr_linear_forward(x_small, params, compute_dtype=jnp.float32)
    jax.block_until_ready(out_small)
    ref_small = reference_forward(x_small, params)
    assert out_small.shape == (8, 1), out_small.shape
    assert jnp.allclose(out_small, ref_small, atol=1e-4, rtol=1e-4), \
        "small-batch (f32) mismatch vs reference"

    # Larger batch exercising the multi-step pipelined grid (grid = (2,)).
    x_big = jax.random.normal(kx, (1024, INPUT_DIM), dtype=jnp.float32)
    ref_big = reference_forward(x_big, params)

    out_big_f32 = ctest_mlr_linear_forward(x_big, params, compute_dtype=jnp.float32)
    jax.block_until_ready(out_big_f32)
    assert out_big_f32.shape == (1024, 1), out_big_f32.shape
    assert jnp.allclose(out_big_f32, ref_big, atol=1e-4, rtol=1e-4), \
        "tiled-batch (f32) mismatch vs reference"

    # Default fast path: bf16 MXU operands, f32 accumulation (looser tolerance).
    out_big_bf16 = ctest_mlr_linear_forward(x_big, params)
    jax.block_until_ready(out_big_bf16)
    assert out_big_bf16.shape == (1024, 1), out_big_bf16.shape
    assert jnp.allclose(out_big_bf16, ref_big, atol=5e-2, rtol=5e-2), \
        "tiled-batch (bf16) mismatch vs reference"

    print("KERNEL_OK")
</pallas_src>

<mosaic_0001>
module attributes {stable_mosaic.version = 11 : i64} {
  func.func @_mlp_kernel(%arg0: i32, %arg1: memref<8x61xf32, #tpu.memory_space<vmem>>, %arg2: memref<61x128xf32, #tpu.memory_space<vmem>>, %arg3: memref<1x128xf32, #tpu.memory_space<vmem>>, %arg4: memref<8x128xf32, #tpu.memory_space<vmem>>, %arg5: memref<8x1xf32, #tpu.memory_space<vmem>>, %arg6: memref<8x1xf32, #tpu.memory_space<vmem>>, %arg7: memref<1x1xf32, #tpu.memory_space<vmem>>, %arg8: memref<1x1x8xf32, #tpu.memory_space<vmem>>) attributes {dimension_semantics = [#tpu.dimension_semantics<parallel>], iteration_bounds = array<i64: 1>, scalar_prefetch = 0 : i64, scratch_operands = 0 : i64, tpu.core_type = #tpu.core_type<tc>, window_params = [{transform_indices = @transform_0, window_bounds = array<i64: 8, 61>}, {pipeline_mode = #tpu.pipeline_mode<synchronous>, transform_indices = @transform_1, window_bounds = array<i64: 61, 128>}, {pipeline_mode = #tpu.pipeline_mode<synchronous>, transform_indices = @transform_2, window_bounds = array<i64: 1, 128>}, {pipeline_mode = #tpu.pipeline_mode<synchronous>, transform_indices = @transform_3, window_bounds = array<i64: 8, 128>}, {pipeline_mode = #tpu.pipeline_mode<synchronous>, transform_indices = @transform_4, window_bounds = array<i64: 8, 1>}, {pipeline_mode = #tpu.pipeline_mode<synchronous>, transform_indices = @transform_5, window_bounds = array<i64: 8, 1>}, {pipeline_mode = #tpu.pipeline_mode<synchronous>, transform_indices = @transform_6, window_bounds = array<i64: 1, 1>}, {transform_indices = @transform_7, window_bounds = array<i64: 1, 1, 8>}]} {
    %c0 = arith.constant 0 : index
    %c0_0 = arith.constant 0 : index
    %0 = vector.load %arg1[%c0, %c0_0] : memref<8x61xf32, #tpu.memory_space<vmem>>, vector<8x61xf32>
    %c0_1 = arith.constant 0 : index
    %c0_2 = arith.constant 0 : index
    %1 = vector.load %arg2[%c0_1, %c0_2] : memref<61x128xf32, #tpu.memory_space<vmem>>, vector<61x128xf32>
    %cst = arith.constant dense<0.000000e+00> : vector<8x128xf32>
    %2 = tpu.matmul %0, %1, %cst {dimension_numbers = #tpu.dot_dimension_numbers<[1], [0], [0], [1], [0, 0, 1, 1], [], []>} : vector<8x61xf32>, vector<61x128xf32>, vector<8x128xf32> -> vector<8x128xf32>
    %c0_3 = arith.constant 0 : index
    %c0_4 = arith.constant 0 : index
    %3 = vector.load %arg3[%c0_3, %c0_4] : memref<1x128xf32, #tpu.memory_space<vmem>>, vector<1x128xf32>
    %4 = vector.broadcast %3 : vector<1x128xf32> to vector<8x128xf32>
    %5 = arith.addf %2, %4 : vector<8x128xf32>
    %cst_5 = arith.constant 0.000000e+00 : f32
    %6 = vector.broadcast %cst_5 : f32 to vector<8x128xf32>
    %7 = arith.maximumf %5, %6 : vector<8x128xf32>
    %8 = tpu.transpose %7, [1, 0] : vector<8x128xf32> -> vector<128x8xf32>
    %c0_6 = arith.constant 0 : index
    %c0_7 = arith.constant 0 : index
    %9 = vector.load %arg4[%c0_6, %c0_7] : memref<8x128xf32, #tpu.memory_space<vmem>>, vector<8x128xf32>
    %cst_8 = arith.constant dense<0.000000e+00> : vector<8x8xf32>
    %10 = tpu.matmul %9, %8, %cst_8 {dimension_numbers = #tpu.dot_dimension_numbers<[1], [0], [0], [1], [0, 0, 1, 1], [], []>} : vector<8x128xf32>, vector<128x8xf32>, vector<8x8xf32> -> vector<8x8xf32>
    %c0_9 = arith.constant 0 : index
    %c0_10 = arith.constant 0 : index
    %11 = vector.load %arg5[%c0_9, %c0_10] : memref<8x1xf32, #tpu.memory_space<vmem>>, vector<8x1xf32>
    %12 = vector.broadcast %11 : vector<8x1xf32> to vector<8x8xf32>
    %13 = arith.addf %10, %12 : vector<8x8xf32>
    %cst_11 = arith.constant 0.000000e+00 : f32
    %14 = vector.broadcast %cst_11 : f32 to vector<8x8xf32>
    %15 = arith.maximumf %13, %14 : vector<8x8xf32>
    %c0_12 = arith.constant 0 : index
    %c0_13 = arith.constant 0 : index
    %16 = vector.load %arg6[%c0_12, %c0_13] : memref<8x1xf32, #tpu.memory_space<vmem>>, vector<8x1xf32>
    %17 = vector.broadcast %16 : vector<8x1xf32> to vector<8x8xf32>
    %18 = arith.mulf %15, %17 : vector<8x8xf32>
    %cst_14 = arith.constant dense<0.000000e+00> : vector<8xf32>
    %19 = vector.multi_reduction <add>, %18, %cst_14 [0] : vector<8x8xf32> to vector<8xf32>
    %20 = vector.shape_cast %19 : vector<8xf32> to vector<1x8xf32>
    %c0_15 = arith.constant 0 : index
    %c0_16 = arith.constant 0 : index
    %21 = vector.load %arg7[%c0_15, %c0_16] : memref<1x1xf32, #tpu.memory_space<vmem>>, vector<1x1xf32>
    %22 = vector.broadcast %21 : vector<1x1xf32> to vector<1x8xf32>
    %23 = arith.addf %20, %22 : vector<1x8xf32>
    %c0_17 = arith.constant 0 : index
    %c0_18 = arith.constant 0 : index
    %c0_19 = arith.constant 0 : index
    %24 = vector.load %arg8[%c0_17, %c0_18, %c0_19] : memref<1x1x8xf32, #tpu.memory_space<vmem>>, vector<1x1x8xf32>
    %25 = vector.shape_cast %24 : vector<1x1x8xf32> to vector<1x8xf32>
    %26 = vector.shape_cast %23 : vector<1x8xf32> to vector<1x1x8xf32>
    tpu.vector_store %arg8[%c0_17, %c0_18, %c0_19], %26 {strides = array<i32>} : memref<1x1x8xf32, #tpu.memory_space<vmem>>, vector<1x1x8xf32>,
    return
  }
  func.func @transform_0(%arg0: i32) -> (i32, i32) {
    %c0_i32 = arith.constant 0 : i32
    %c0_i32_0 = arith.constant 0 : i32
    return %arg0, %c0_i32 : i32, i32
  }
  func.func @transform_1(%arg0: i32) -> (i32, i32) {
    %c0_i32 = arith.constant 0 : i32
    %c0_i32_0 = arith.constant 0 : i32
    %c0_i32_1 = arith.constant 0 : i32
    return %c0_i32, %c0_i32_0 : i32, i32
  }
  func.func @transform_2(%arg0: i32) -> (i32, i32) {
    %c0_i32 = arith.constant 0 : i32
    %c0_i32_0 = arith.constant 0 : i32
    %c0_i32_1 = arith.constant 0 : i32
    return %c0_i32, %c0_i32_0 : i32, i32
  }
  func.func @transform_3(%arg0: i32) -> (i32, i32) {
    %c0_i32 = arith.constant 0 : i32
    %c0_i32_0 = arith.constant 0 : i32
    %c0_i32_1 = arith.constant 0 : i32
    return %c0_i32, %c0_i32_0 : i32, i32
  }
  func.func @transform_4(%arg0: i32) -> (i32, i32) {
    %c0_i32 = arith.constant 0 : i32
    %c0_i32_0 = arith.constant 0 : i32
    %c0_i32_1 = arith.constant 0 : i32
    return %c0_i32, %c0_i32_0 : i32, i32
  }
  func.func @transform_5(%arg0: i32) -> (i32, i32) {
    %c0_i32 = arith.constant 0 : i32
    %c0_i32_0 = arith.constant 0 : i32
    %c0_i32_1 = arith.constant 0 : i32
    return %c0_i32, %c0_i32_0 : i32, i32
  }
  func.func @transform_6(%arg0: i32) -> (i32, i32) {
    %c0_i32 = arith.constant 0 : i32
    %c0_i32_0 = arith.constant 0 : i32
    %c0_i32_1 = arith.constant 0 : i32
    return %c0_i32, %c0_i32_0 : i32, i32
  }
  func.func @transform_7(%arg0: i32) -> (i32, i32, i32) {
    %c0_i32 = arith.constant 0 : i32
    %c0_i32_0 = arith.constant 0 : i32
    %c0_i32_1 = arith.constant 0 : i32
    return %arg0, %c0_i32, %c0_i32_0 : i32, i32, i32
  }
}

</mosaic_0001>

<bundles_post_ra>
// kernel: tpu_custom_call.1
= control target key start
LH: loop header
LB: loop body
LE: loop exit
PB: predicated region body
PF: predicated region fallthrough
CT: control target
= control target key end

     0   :  { %s460_s0 = inlined_call_operand.vmem [shape: f32[8,61], index: 0, kind: input, shape index: {}]   ;;  %s461_s1 = inlined_call_operand.hbm [shape: f32[61,128], index: 1, kind: input, shape index: {}]   ;;  %s462_s2 = inlined_call_operand.vmem [shape: f32[1,128], index: 2, kind: input, shape index: {}]   ;;  %s463_s3 = inlined_call_operand.vmem [shape: f32[8,128], index: 3, kind: input, shape index: {}]   ;;  %s464_s4 = inlined_call_operand.vmem [shape: f32[8,1], index: 4, kind: input, shape index: {}]   ;;  %s465_s5 = inlined_call_operand.vmem [shape: f32[8,1], index: 5, kind: input, shape index: {}]   ;;  %s466_s6 = inlined_call_operand.<no memory space> [shape: f32[1,1], index: 6, kind: input, shape index: {}]   ;;  %s467_s7 = inlined_call_operand.hbm [shape: f32[1,1,8], index: 7, kind: output, shape index: {}]  }
   0x1   :  { %v12_v0 = vstv %s466_s6 }
   0x2   :  { %13 = vst [vmem:[#allocation2] sm:$0x1] %v12_v0 }
   0x3   :  { %14 = vsyncpa [#allocation4], 0 }
   0x4   :  { %15 = vsyncpa [#allocation5], 0  ;;  %s369_s26 = smov [#allocation3]   ;;  %s321_s30 = scalar_lea.hbm %s461_s1, 1024 }
   0x5   :  { %s23_s27 = sshll.u32 %s369_s26, 4  ;;  %p322_p0 = scmp.ne.s32.totalorder %s461_s1, %s321_s30  ;;  %s24_s27 = int_to_ptr.vmem [resolvable:$true] %s23_s27 }
   0x6   :  { %p325_p1 = scmp.lt.u32.totalorder %s321_s30, %s461_s1 }
   0x8   :  { %p327_p2 = pnand %p325_p1, %p322_p0 }
   0xa   :  { %330 = shalt.err (!%p327_p2)
}
   0xb   :  { %s331_s6 = scalar_lea.vmem %s24_s27, 1024  ;;  %p336_p4 = scmp.lt.s32.totalorder %s24_s27, %s24_s27 }
   0xc   :  { %p332_p3 = scmp.ne.s32.totalorder %s24_s27, %s331_s6  ;;  %p337_p5 = scmp.lt.s32.totalorder %s331_s6, %s331_s6 }
   0xe   :  { %p338_p6 = por %p337_p5, %p336_p4 }
  0x10   :  { %p339_p7 = pnand %p338_p6, %p332_p3 }
  0x12   :  { %342 = shalt.err (!%p339_p7)
}
  0x13   :  { %s370_s12 = smov 128   ;;  %s371_s13 = smov 8  }
  0x14   :  { %29 = dma.hbm_to_vmem [thread:$0]  %s461_s1, 1024, %s24_s27, [#allocation4], %s370_s12, %s370_s12, %s371_s13  }
  0x15   :  { %365 = dma.done.wait [#allocation4], 1024  }
  0x16   :  { %366 = vsyncadd [#allocation4], 4294966272  ;;  %v372_v1 = vmov 0.0|0.0   ;;  %vm373_vm0 = vmmov 0   ;;  %v374_v2 = vmov 0.0   ;;  %v44_v3 = vld [vmem:[#allocation3] sm:$0xff]  ;;  %v237_v32 = vlaneseq }
  0x17   :  { %297 = vmatprep.subr.bf16.mxu0 %v372_v1  ;;  %289 = vmatprep.mubr.msk.f32.mxu0 %vm373_vm0, %v374_v2  ;;  %v45_v4 = vld [vmem:[#allocation3 + $0x8] sm:$0xff]  ;;  %v46_v5 = vld [vmem:[#allocation3 + $0x10] sm:$0xff]  ;;  %v47_v7 = vld [vmem:[#allocation3 + $0x18] sm:$0xff]  ;;  %vm63_vm1 = vcmask 1044480   ;;  %vm375_vm2 = vmmov 1   ;;  %vm59_vm4 = vcmask 498688  }
  0x18   :  { %292 = vmatprep.subr.mxu1 %v374_v2  ;;  %294 = vmatprep.mubr.msk.f32.mxu1 %vm373_vm0, %v374_v2  ;;  %v298_v6 = vpack.c.bf16 %v45_v4, %v44_v3  ;;  %v301_v8 = vpack.c.bf16 %v47_v7, %v46_v5  ;;  %v48_v9 = vld [vmem:[#allocation3 + $0x20] sm:$0xff]  ;;  %v49_v10 = vld [vmem:[#allocation3 + $0x28] sm:$0xff]  ;;  %v50_v12 = vld [vmem:[#allocation3 + $0x30] sm:$0xff]  ;;  %v376_v18 = vmov 0   ;;  %vm223_vm5 = vcmask 64512  }
  0x19   :  { %v304_v11 = vpack.c.bf16 %v49_v10, %v48_v9  ;;  %v51_v13 = vld [vmem:[#allocation3 + $0x38] sm:$0x1f]  ;;  %vm308_vm3 = vmpackc.low %vm63_vm1, %vm375_vm2  ;;  %v43_v15 = vld [vmem:[%s460_s0] sm:$0xff]  ;;  %319 = vset.pattern.permute.xlu0 %v376_v18  ;;  %320 = vset.pattern.permute.xlu1 %v376_v18  ;;  %v238_v36 = vshrl.u32 %v237_v32, 7  ;;  %vm242_vm6 = vcmask 57344  }
  0x1a   :  { %299 = vmatpush3.bf16.msra.mxu0 %v298_v6  ;;  %v307_v14 = vpack.c.bf16 %v51_v13, %v50_v12  ;;  %v139_v16 = vld [vmem:[%s464_s4] sm:$0xff] }
  0x1b   :  { %300 = vmatprep.subr.bf16.mxu0 %v372_v1  ;;  %v231_v17 = vld [vmem:[#allocation2] sm:$0x1]  ;;  %142 = vperm.xlu0 %319, %v139_v16   ;;  %v239_v39 = vsub.s32 0, %v238_v36 }
  0x1c   :  { %234 = vperm.xlu1 %320, %v231_v17   ;;  %v216_v19 = vld [vmem:[%s465_s5] sm:$0xff] }
  0x1d   :  { %v259_v20 = vld [vmem:[%s462_s2] ss:$0 sm:$0xff]  ;;  %s377_s2 = smov [#allocation6]  }
  0x1e   :  { %302 = vmatpush3.bf16.msra.mxu0 %v301_v8  ;;  %v138_v25 = vld [vmem:[%s463_s3] sm:$0xff]  ;;  %s250_s3 = sshll.u32 %s377_s2, 4  ;;  %s251_s3 = int_to_ptr.vmem [resolvable:$true] %s250_s3 }
  0x1f   :  { %303 = vmatprep.subr.bf16.mxu0 %v372_v1  ;;  %219 = vperm.xlu0 %319, %v216_v19   ;;  %s343_s5 = scalar_lea.vmem %s251_s3, 16  ;;  %s347_s23 = scalar_lea.vmem %s251_s3, 32 }
  0x20   :  { %p344_p8 = scmp.ne.s32.totalorder %s251_s3, %s343_s5  ;;  %p348_p9 = scmp.lt.s32.totalorder %s251_s3, %s251_s3 }
  0x21   :  { %p349_p10 = scmp.lt.s32.totalorder %s347_s23, %s343_s5 }
  0x22   :  { %305 = vmatpush3.bf16.msra.mxu0 %v304_v11 }
  0x23   :  { %306 = vmatprep.subr.bf16.mxu0 %v372_v1  ;;  %p350_p11 = por %p349_p10, %p348_p9 }
  0x25   :  { %p351_p12 = pnand %p350_p11, %p344_p8 }
  0x26   :  { %309 = vmatpush3.bf16.msk.msra.mxu0 %vm308_vm3, %v307_v14 }
  0x29   :  { %290 = vmatmul.mubr.msk.f32.vlgmr.msra.gmra.mrb[0].mxu0 %vm59_vm4, %v43_v15 }
  0x9a   :  { %v143_v26 = vpop.permute.xlu0 %142 }
  0x9b   :  { %v235_v40 = vpop.permute.xlu1 %234 }
  0x9c   :  { %v240_v43 = vrot.slane %v235_v40, %v239_v39 }
  0x9e   :  { %v220_v31 = vpop.permute.xlu0 %219 }
  0xfc   :  { %v133_v21 = vpop.f32.mrb[0].mxu0 }
  0xfd   :  { %v134_v22 = vadd.f32 %v259_v20, %v133_v21  ;;  %v291_v23 = vpop.f32.mrb[1].mxu0 }
  0xff   :  { %v137_v24 = vmax.f32 %v134_v22, 0.0 }
 0x101   :  { %293 = vmatpush3.xpose.msra.mxu1 %v137_v24 }
 0x104   :  { %295 = vmatmul.mubr.f32.vlgmr.msra.gmra.mrb[0].mxu1 %v138_v25 }
 0x1d7   :  { %v211_v27 = vpop.f32.mrb[0].mxu1 }
 0x1d8   :  { %v212_v28 = vadd.f32 %v211_v27, %v143_v26  ;;  %v296_v29 = vpop.f32.mrb[1].mxu1 }
 0x1da   :  { %v215_v30 = vmax.f32 %v212_v28, 0.0 }
 0x1dc   :  { %v222_v33 = vmul.f32 %v220_v31, %v215_v30 }
 0x1de   :  { %v224_v34 = vsel %vm223_vm5, %v222_v33, 0.0 }
 0x1df   :  { %v225_v35 = vrot.slane %v224_v34, 4 }
 0x1e1   :  { %v226_v37 = vadd.f32 %v225_v35, %v224_v34 }
 0x1e3   :  { %v227_v38 = vrot.slane %v226_v37, 2 }
 0x1e5   :  { %v228_v41 = vadd.f32 %v227_v38, %v226_v37 }
 0x1e7   :  { %v229_v42 = vrot.slane %v228_v41, 1 }
 0x1e9   :  { %v230_v44 = vadd.f32 %v229_v42, %v228_v41 }
 0x1eb   :  { %v241_v45 = vadd.f32 %v240_v43, %v230_v44 }
 0x1ed   :  { %243 = vst.msk [vmem:[#allocation6] sm:$0x1] %vm242_vm6, %v241_v45 }
 0x1ee   :  { %354 = shalt.err (!%p351_p12)
}
 0x1ef   :  { %s355_s26 = scalar_lea.hbm %s467_s7, 16 }
 0x1f0   :  { %p356_p13 = scmp.ne.s32.totalorder %s467_s7, %s355_s26  ;;  %p359_p0 = scmp.lt.u32.totalorder %s355_s26, %s467_s7 }
 0x1f2   :  { %p361_p1 = pnand %p359_p0, %p356_p13 }
 0x1f4   :  { %364 = shalt.err (!%p361_p1)
}
 0x1f5   :  { %253 = dma.vmem_to_hbm [thread:$0]  %s251_s3, 16, %s467_s7, [#allocation5]  }
 0x1f6   :  { %367 = dma.done.wait [#allocation5], 16  }
 0x1f7   :  { %368 = vsyncadd [#allocation5], 4294967280 }
 0x1f8   :  { %257 = vsyncpa [#allocation4], 1 }
 0x1f9   :  { %258 = vsyncpa [#allocation5], 1 }

</bundles_post_ra>
